<compile_context>
chip_gen: v7x
topology: tpu7x:2x2x1
jax: 0.10.0
libtpu: 0.0.40
codegen_flags: <defaults>
</compile_context>

<pallas_src>
import functools
import math

import jax
import jax.numpy as jnp
from jax.experimental import pallas as pl
from jax.experimental.pallas import tpu as pltpu


# ---------------------------------------------------------------------------
# helpers
# ---------------------------------------------------------------------------

def _largest_divisor_tile(dim, candidates):
    """Largest candidate tile that exactly divides `dim`, else the full dim."""
    for c in candidates:
        if dim % c == 0:
            return c
    return dim


def _vmem_capacity_bytes(default=64 * 1024 * 1024):
    """Generation-aware VMEM capacity (v5e/v6e: 128 MiB, v7x: 64 MiB per TC)."""
    try:
        return int(pltpu.get_tpu_info().vmem_capacity_bytes)
    except Exception:
        return default  # conservative (v7x-sized) fallback


# ---------------------------------------------------------------------------
# 1) Linear: y = x @ W + b   (tiled matmul, f32 accumulator)
# ---------------------------------------------------------------------------

def _linear_kernel(x_ref, w_ref, b_ref, o_ref, acc_ref):
    @pl.when(pl.program_id(2) == 0)
    def _():
        acc_ref[...] = jnp.zeros_like(acc_ref)

    acc_ref[...] += jnp.dot(
        x_ref[...].astype(jnp.float32),
        w_ref[...].astype(jnp.float32),
        preferred_element_type=jnp.float32,
    )

    @pl.when(pl.program_id(2) == pl.num_programs(2) - 1)
    def _():
        o_ref[...] = (acc_ref[...] + b_ref[...].astype(jnp.float32)).astype(o_ref.dtype)


def linear(x2, w, b):
    """x2: (rows, K); w: (K, N); b: (N,) -> (rows, N)."""
    rows, k_dim = x2.shape
    n_dim = w.shape[1]
    tm = _largest_divisor_tile(rows, (256, 128, 64, 32, 16, 8))
    tn = _largest_divisor_tile(n_dim, (256, 128))
    tk = _largest_divisor_tile(k_dim, (256, 128))
    grid = (rows // tm, n_dim // tn, k_dim // tk)

    return pl.pallas_call(
        _linear_kernel,
        out_shape=jax.ShapeDtypeStruct((rows, n_dim), x2.dtype),
        grid_spec=pltpu.PrefetchScalarGridSpec(
            num_scalar_prefetch=0,
            grid=grid,
            in_specs=[
                pl.BlockSpec((tm, tk), lambda i, j, k: (i, k)),
                pl.BlockSpec((tk, tn), lambda i, j, k: (k, j)),
                pl.BlockSpec((1, tn), lambda i, j, k: (0, j)),
            ],
            out_specs=pl.BlockSpec((tm, tn), lambda i, j, k: (i, j)),
            scratch_shapes=[pltpu.VMEM((tm, tn), jnp.float32)],
        ),
        compiler_params=pltpu.CompilerParams(
            dimension_semantics=("parallel", "parallel", "arbitrary")),
    )(x2, w, b.reshape(1, n_dim))


# ---------------------------------------------------------------------------
# 2) Attention: softmax(Q K^T / sqrt(H) + mask) @ V  (per batch, q-tiled)
# ---------------------------------------------------------------------------

def _attention_kernel(q_ref, k_ref, v_ref, m_ref, o_ref, *, scale):
    q = q_ref[0].astype(jnp.float32)          # (tq, H)
    k = k_ref[0].astype(jnp.float32)          # (S, H)
    v = v_ref[0].astype(jnp.float32)          # (S, H)
    m = m_ref[0].astype(jnp.float32)          # (tq, S)

    s = jnp.einsum("qd,kd->qk", q, k, preferred_element_type=jnp.float32)
    s = s * scale + m
    s_max = jnp.max(s, axis=-1, keepdims=True)
    p = jnp.exp(s - s_max)
    denom = jnp.sum(p, axis=-1, keepdims=True)
    p = p / denom
    ctx = jnp.dot(p, v, preferred_element_type=jnp.float32)
    o_ref[0] = ctx.astype(o_ref.dtype)


def attention(q, k, v, mask):
    """q,k,v: (B, S, H); mask: (B, S, S) additive -> (B, S, H)."""
    B, S, H = q.shape
    tq = _largest_divisor_tile(S, (256, 128, 64, 32, 16, 8))
    kernel = functools.partial(_attention_kernel, scale=1.0 / math.sqrt(H))

    return pl.pallas_call(
        kernel,
        out_shape=jax.ShapeDtypeStruct((B, S, H), q.dtype),
        grid_spec=pltpu.PrefetchScalarGridSpec(
            num_scalar_prefetch=0,
            grid=(B, S // tq),
            in_specs=[
                pl.BlockSpec((1, tq, H), lambda b, i: (b, i, 0)),
                pl.BlockSpec((1, S, H), lambda b, i: (b, 0, 0)),
                pl.BlockSpec((1, S, H), lambda b, i: (b, 0, 0)),
                pl.BlockSpec((1, tq, S), lambda b, i: (b, i, 0)),
            ],
            out_specs=pl.BlockSpec((1, tq, H), lambda b, i: (b, i, 0)),
        ),
        compiler_params=pltpu.CompilerParams(
            dimension_semantics=("parallel", "parallel")),
    )(q, k, v, mask)


# ---------------------------------------------------------------------------
# 3) Fused residual-add + TF-style LayerNorm (eps inside sqrt)
# ---------------------------------------------------------------------------

def _residual_layernorm_kernel(h_ref, r_ref, w_ref, b_ref, o_ref, *, eps):
    # Two-pass mean/variance kept for numerical stability (review note).
    x = h_ref[...].astype(jnp.float32) + r_ref[...].astype(jnp.float32)
    u = jnp.mean(x, axis=-1, keepdims=True)
    xc = x - u
    s = jnp.mean(xc * xc, axis=-1, keepdims=True)
    y = xc * jax.lax.rsqrt(s + eps)
    o_ref[...] = (w_ref[...].astype(jnp.float32) * y
                  + b_ref[...].astype(jnp.float32)).astype(o_ref.dtype)


def residual_layernorm(hidden2, residual2, weight, bias, *, eps=1e-12):
    """hidden2, residual2: (rows, H); weight, bias: (H,)."""
    rows, h = hidden2.shape
    itemsize = jnp.dtype(hidden2.dtype).itemsize

    # VMEM-budgeted row tile (generation aware): double-buffered in/res/out
    # blocks plus f32 intermediates must fit comfortably in scoped VMEM.
    vmem_cap = _vmem_capacity_bytes()
    budget = vmem_cap // 3
    per_row = h * (2 * 3 * itemsize + 2 * 4)     # 2 bufs x 3 arrays + f32 temps
    tm = max(8, min(1024, budget // max(per_row, 1)))
    tm = max(8, (tm // 8) * 8)                   # keep sublane alignment
    if tm >= rows:
        tm = rows                                # small inputs: single full tile
    grid = (pl.cdiv(rows, tm),)                  # cdiv grid; last tile masked

    vmem_limit = max(32 * 1024 * 1024,
                     min(vmem_cap * 3 // 4, 128 * 1024 * 1024))

    kernel = functools.partial(_residual_layernorm_kernel, eps=eps)
    return pl.pallas_call(
        kernel,
        out_shape=jax.ShapeDtypeStruct((rows, h), hidden2.dtype),
        grid_spec=pltpu.PrefetchScalarGridSpec(
            num_scalar_prefetch=0,
            grid=grid,
            in_specs=[
                pl.BlockSpec((tm, h), lambda i: (i, 0)),
                pl.BlockSpec((tm, h), lambda i: (i, 0)),
                pl.BlockSpec((1, h), lambda i: (0, 0)),
                pl.BlockSpec((1, h), lambda i: (0, 0)),
            ],
            out_specs=pl.BlockSpec((tm, h), lambda i: (i, 0)),
        ),
        compiler_params=pltpu.CompilerParams(
            dimension_semantics=("parallel",),     # v7x: shard rows across 2 TCs
            vmem_limit_bytes=int(vmem_limit),
        ),
    )(hidden2, residual2, weight.reshape(1, h), bias.reshape(1, h))


# ---------------------------------------------------------------------------
# Full forward (eval mode) + pure-JAX reference
# ---------------------------------------------------------------------------

def synthesis_v1(input_tensor, attention_mask, params, *, eps=1e-12):
    B, S, H = input_tensor.shape
    x2 = input_tensor.reshape(B * S, H)

    q = linear(x2, params["wq"], params["bq"]).reshape(B, S, H)
    k = linear(x2, params["wk"], params["bk"]).reshape(B, S, H)
    v = linear(x2, params["wv"], params["bv"]).reshape(B, S, H)

    mask = attention_mask
    if mask.ndim == 4:
        mask = jnp.squeeze(mask, axis=1)          # matches attention_mask.squeeze(1)
    mask = jnp.broadcast_to(mask, (B, S, S)).astype(input_tensor.dtype)

    ctx = attention(q, k, v, mask)                # (B, S, H)
    hidden_states = linear(ctx.reshape(B * S, H), params["wd"], params["bd"])
    # TODO(synk): attn_dropout / out_dropout are identity in eval mode; a
    # training-mode version would use pltpu.prng_seed + pltpu.prng_random_bits.
    out2 = residual_layernorm(hidden_states, x2, params["ln_w"], params["ln_b"],
                              eps=eps)
    return out2.reshape(B, S, H)


def synthesis_v1_ref(x, attention_mask, params, eps=1e-12):
    q = x @ params["wq"] + params["bq"]
    k = x @ params["wk"] + params["bk"]
    v = x @ params["wv"] + params["bv"]
    scores = jnp.einsum("bqh,bkh->bqk", q, k) / jnp.sqrt(jnp.float32(x.shape[-1]))
    m = attention_mask
    if m.ndim == 4:
        m = jnp.squeeze(m, axis=1)
    scores = scores + m
    probs = jax.nn.softmax(scores, axis=-1)
    ctx = jnp.einsum("bqk,bkh->bqh", probs, v)
    h = ctx @ params["wd"] + params["bd"]
    y = h + x
    u = jnp.mean(y, axis=-1, keepdims=True)
    s = jnp.mean((y - u) ** 2, axis=-1, keepdims=True)
    yn = (y - u) / jnp.sqrt(s + eps)
    return params["ln_w"] * yn + params["ln_b"]


if __name__ == "__main__":
    key = jax.random.PRNGKey(0)
    batch, seq, hidden = 2, 8, 32
    keys = jax.random.split(key, 8)

    x = jax.random.normal(keys[0], (batch, seq, hidden), dtype=jnp.float32)
    keep = jax.random.bernoulli(keys[1], p=0.85, shape=(batch, 1, seq, seq))
    attention_mask = jnp.where(keep, 0.0, -10000.0).astype(jnp.float32)

    def init_linear(k, h):
        k1, k2 = jax.random.split(k)
        w = jax.random.normal(k1, (h, h), dtype=jnp.float32) / jnp.sqrt(h)
        b = jax.random.normal(k2, (h,), dtype=jnp.float32) * 0.02
        return w, b

    wq, bq = init_linear(keys[2], hidden)
    wk, bk = init_linear(keys[3], hidden)
    wv, bv = init_linear(keys[4], hidden)
    wd, bd = init_linear(keys[5], hidden)
    params = dict(
        wq=wq, bq=bq, wk=wk, bk=bk, wv=wv, bv=bv, wd=wd, bd=bd,
        ln_w=jnp.ones((hidden,), dtype=jnp.float32),   # LayerNorm weight = ones
        ln_b=jnp.zeros((hidden,), dtype=jnp.float32),  # LayerNorm bias = zeros
    )

    out = synthesis_v1(x, attention_mask, params)
    out = jax.block_until_ready(out)

    with jax.default_matmul_precision("highest"):
        ref = synthesis_v1_ref(x, attention_mask, params)

    assert out.shape == x.shape
    max_err = jnp.max(jnp.abs(out - ref))
    assert jnp.allclose(out, ref, atol=1e-2, rtol=1e-2), f"max abs err {max_err}"

    print("KERNEL_OK")
</pallas_src>

<mosaic_0001>
module attributes {stable_mosaic.version = 11 : i64} {
  func.func @_linear_kernel(%arg0: i32, %arg1: i32, %arg2: i32, %arg3: memref<16x32xf32, #tpu.memory_space<vmem>>, %arg4: memref<32x32xf32, #tpu.memory_space<vmem>>, %arg5: memref<1x32xf32, #tpu.memory_space<vmem>>, %arg6: memref<16x32xf32, #tpu.memory_space<vmem>>, %arg7: memref<16x32xf32, #tpu.memory_space<vmem>>) attributes {dimension_semantics = [#tpu.dimension_semantics<parallel>, #tpu.dimension_semantics<parallel>, #tpu.dimension_semantics<arbitrary>], iteration_bounds = array<i64: 1, 1, 1>, scalar_prefetch = 0 : i64, scratch_operands = 1 : i64, tpu.core_type = #tpu.core_type<tc>, window_params = [{transform_indices = @transform_0, window_bounds = array<i64: 16, 32>}, {transform_indices = @transform_1, window_bounds = array<i64: 32, 32>}, {transform_indices = @transform_2, window_bounds = array<i64: 1, 32>}, {transform_indices = @transform_3, window_bounds = array<i64: 16, 32>}]} {
    %c0_i32 = arith.constant 0 : i32
    %0 = arith.cmpi eq, %arg2, %c0_i32 : i32
    %1 = arith.extui %0 : i1 to i32
    %c0_i32_0 = arith.constant 0 : i32
    %2 = arith.cmpi ne, %1, %c0_i32_0 : i32
    scf.if %2 {
      %cst_10 = arith.constant 0.000000e+00 : f32
      %12 = vector.broadcast %cst_10 : f32 to vector<16x32xf32>
      %c0_11 = arith.constant 0 : index
      %c0_12 = arith.constant 0 : index
      %13 = vector.load %arg7[%c0_11, %c0_12] : memref<16x32xf32, #tpu.memory_space<vmem>>, vector<16x32xf32>
      tpu.vector_store %arg7[%c0_11, %c0_12], %12 {strides = array<i32>} : memref<16x32xf32, #tpu.memory_space<vmem>>, vector<16x32xf32>,
    } else {
    }
    %c0 = arith.constant 0 : index
    %c0_1 = arith.constant 0 : index
    %3 = vector.load %arg7[%c0, %c0_1] : memref<16x32xf32, #tpu.memory_space<vmem>>, vector<16x32xf32>
    %c0_2 = arith.constant 0 : index
    %c0_3 = arith.constant 0 : index
    %4 = vector.load %arg3[%c0_2, %c0_3] : memref<16x32xf32, #tpu.memory_space<vmem>>, vector<16x32xf32>
    %c0_4 = arith.constant 0 : index
    %c0_5 = arith.constant 0 : index
    %5 = vector.load %arg4[%c0_4, %c0_5] : memref<32x32xf32, #tpu.memory_space<vmem>>, vector<32x32xf32>
    %cst = arith.constant dense<0.000000e+00> : vector<16x32xf32>
    %6 = tpu.matmul %4, %5, %cst {dimension_numbers = #tpu.dot_dimension_numbers<[1], [0], [0], [1], [0, 0, 1, 1], [], []>} : vector<16x32xf32>, vector<32x32xf32>, vector<16x32xf32> -> vector<16x32xf32>
    %7 = arith.addf %3, %6 : vector<16x32xf32>
    %c0_6 = arith.constant 0 : index
    %c0_7 = arith.constant 0 : index
    %8 = vector.load %arg7[%c0_6, %c0_7] : memref<16x32xf32, #tpu.memory_space<vmem>>, vector<16x32xf32>
    tpu.vector_store %arg7[%c0_6, %c0_7], %7 {strides = array<i32>} : memref<16x32xf32, #tpu.memory_space<vmem>>, vector<16x32xf32>,
    %c0_i32_8 = arith.constant 0 : i32
    %9 = arith.cmpi eq, %arg2, %c0_i32_8 : i32
    %10 = arith.extui %9 : i1 to i32
    %c0_i32_9 = arith.constant 0 : i32
    %11 = arith.cmpi ne, %10, %c0_i32_9 : i32
    scf.if %11 {
      %c0_10 = arith.constant 0 : index
      %c0_11 = arith.constant 0 : index
      %12 = vector.load %arg7[%c0_10, %c0_11] : memref<16x32xf32, #tpu.memory_space<vmem>>, vector<16x32xf32>
      %c0_12 = arith.constant 0 : index
      %c0_13 = arith.constant 0 : index
      %13 = vector.load %arg5[%c0_12, %c0_13] : memref<1x32xf32, #tpu.memory_space<vmem>>, vector<1x32xf32>
      %14 = vector.broadcast %13 : vector<1x32xf32> to vector<16x32xf32>
      %15 = arith.addf %12, %14 : vector<16x32xf32>
      %c0_14 = arith.constant 0 : index
      %c0_15 = arith.constant 0 : index
      %16 = vector.load %arg6[%c0_14, %c0_15] : memref<16x32xf32, #tpu.memory_space<vmem>>, vector<16x32xf32>
      tpu.vector_store %arg6[%c0_14, %c0_15], %15 {strides = array<i32>} : memref<16x32xf32, #tpu.memory_space<vmem>>, vector<16x32xf32>,
    } else {
    }
    return
  }
  func.func @transform_0(%arg0: i32, %arg1: i32, %arg2: i32) -> (i32, i32) {
    %c0_i32 = arith.constant 0 : i32
    return %arg0, %arg2 : i32, i32
  }
  func.func @transform_1(%arg0: i32, %arg1: i32, %arg2: i32) -> (i32, i32) {
    %c0_i32 = arith.constant 0 : i32
    return %arg2, %arg1 : i32, i32
  }
  func.func @transform_2(%arg0: i32, %arg1: i32, %arg2: i32) -> (i32, i32) {
    %c0_i32 = arith.constant 0 : i32
    %c0_i32_0 = arith.constant 0 : i32
    return %c0_i32, %arg1 : i32, i32
  }
  func.func @transform_3(%arg0: i32, %arg1: i32, %arg2: i32) -> (i32, i32) {
    %c0_i32 = arith.constant 0 : i32
    return %arg0, %arg1 : i32, i32
  }
}

</mosaic_0001>

<bundles_post_ra>
// kernel: tpu_custom_call.1
= control target key start
LH: loop header
LB: loop body
LE: loop exit
PB: predicated region body
PF: predicated region fallthrough
CT: control target
= control target key end

     0   :  { %8 = vsyncpa [#allocation4], 0  ;;  %s366_s0 = inlined_call_operand.hbm [shape: f32[16,32], index: 0, kind: input, shape index: {}]   ;;  %s367_s1 = inlined_call_operand.hbm [shape: f32[32,32], index: 1, kind: input, shape index: {}]   ;;  %s368_s2 = inlined_call_operand.vmem [shape: f32[1,32], index: 2, kind: input, shape index: {}]   ;;  %s369_s3 = inlined_call_operand.hbm [shape: f32[16,32], index: 3, kind: output, shape index: {}]  }
   0x1   :  { %9 = vsyncpa [#allocation7], 0 }
   0x2   :  { %10 = vsyncpa [#allocation5], 0  ;;  %s284_s12 = smov [#allocation3]   ;;  %s212_s16 = scalar_lea.hbm %s366_s0, 256 }
   0x3   :  { %s16_s13 = sshll.u32 %s284_s12, 4  ;;  %p213_p0 = scmp.ne.s32.totalorder %s366_s0, %s212_s16  ;;  %s17_s13 = int_to_ptr.vmem [resolvable:$true] %s16_s13 }
   0x4   :  { %p216_p1 = scmp.lt.u32.totalorder %s212_s16, %s366_s0 }
   0x6   :  { %p218_p2 = pnand %p216_p1, %p213_p0 }
   0x8   :  { %221 = shalt.err (!%p218_p2)
}
   0x9   :  { %s222_s21 = scalar_lea.vmem %s17_s13, 256  ;;  %p227_p4 = scmp.lt.s32.totalorder %s17_s13, %s17_s13 }
   0xa   :  { %p223_p3 = scmp.ne.s32.totalorder %s17_s13, %s222_s21  ;;  %p228_p5 = scmp.lt.s32.totalorder %s222_s21, %s222_s21 }
   0xc   :  { %p229_p6 = por %p228_p5, %p227_p4 }
   0xe   :  { %p230_p7 = pnand %p229_p6, %p223_p3 }
  0x10   :  { %233 = shalt.err (!%p230_p7)
}
  0x11   :  { %s285_s22 = smov 128   ;;  %s286_s23 = smov 8  }
  0x12   :  { %22 = dma.hbm_to_vmem [thread:$0]  %s366_s0, 256, %s17_s13, [#allocation4], %s285_s22, %s285_s22, %s286_s23  }
  0x13   :  { %s287_s26 = smov [#allocation6]   ;;  %s234_s30 = scalar_lea.hbm %s367_s1, 512 }
  0x14   :  { %s28_s27 = sshll.u32 %s287_s26, 4  ;;  %p235_p8 = scmp.ne.s32.totalorder %s367_s1, %s234_s30  ;;  %s29_s27 = int_to_ptr.vmem [resolvable:$true] %s28_s27 }
  0x15   :  { %p238_p9 = scmp.lt.u32.totalorder %s234_s30, %s367_s1 }
  0x17   :  { %p240_p10 = pnand %p238_p9, %p235_p8 }
  0x19   :  { %243 = shalt.err (!%p240_p10)
}
  0x1a   :  { %s244_s8 = scalar_lea.vmem %s29_s27, 512  ;;  %p249_p12 = scmp.lt.s32.totalorder %s29_s27, %s29_s27 }
  0x1b   :  { %p245_p11 = scmp.ne.s32.totalorder %s29_s27, %s244_s8  ;;  %p250_p13 = scmp.lt.s32.totalorder %s244_s8, %s244_s8 }
  0x1d   :  { %p251_p0 = por %p250_p13, %p249_p12 }
  0x1f   :  { %p252_p1 = pnand %p251_p0, %p245_p11 }
  0x21   :  { %255 = shalt.err (!%p252_p1)
}
  0x22   :  { %34 = dma.hbm_to_vmem [thread:$0]  %s367_s1, 512, %s29_s27, [#allocation7], %s285_s22, %s285_s22, %s286_s23  }
  0x23   :  { %278 = dma.done.wait [#allocation4], 256  }
  0x24   :  { %279 = vsyncadd [#allocation4], 4294967040 }
  0x25   :  { %280 = dma.done.wait [#allocation7], 512  }
  0x26   :  { %281 = vsyncadd [#allocation7], 4294966784  ;;  %vm47_vm0 = vcmask 261120   ;;  %v288_v0 = vmov 0.0   ;;  %v54_v1 = vld [vmem:[#allocation6] sm:$0xff]  ;;  %v55_v2 = vld [vmem:[#allocation6 + $0x8] sm:$0xff] }
  0x27   :  { %49 = vst.msk [vmem:[#allocation2 + $0x8] sm:$0xff] %vm47_vm0, %v288_v0  ;;  %48 = vst.msk [vmem:[#allocation2] sm:$0xff] %vm47_vm0, %v288_v0  ;;  %v56_v3 = vld [vmem:[#allocation6 + $0x10] sm:$0xff]  ;;  %v198_v4 = vpack.c.bf16 %v55_v2, %v54_v1  ;;  %v57_v5 = vld [vmem:[#allocation6 + $0x18] sm:$0xff]  ;;  %s289_s11 = smov [#allocation8]  }
  0x28   :  { %v52_v6 = vld [vmem:[#allocation3] sm:$0xff]  ;;  %v202_v7 = vpack.c.bf16 %v57_v5, %v56_v3  ;;  %v53_v8 = vld [vmem:[#allocation3 + $0x8] sm:$0xff]  ;;  %v180_v15 = vld [vmem:[%s368_s2] ss:$0 sm:$0xff]  ;;  %s165_s12 = sshll.u32 %s289_s11, 4  ;;  %s166_s12 = int_to_ptr.vmem [resolvable:$true] %s165_s12 }
  0x29   :  { %195 = vmatprep.mubr.msk.f32.mxu0 %vm47_vm0, %v52_v6  ;;  %199 = vmatprep.subr.bf16.mxu0 %v198_v4  ;;  %s256_s13 = scalar_lea.vmem %s166_s12, 256  ;;  %p261_p3 = scmp.lt.s32.totalorder %s166_s12, %s166_s12 }
  0x2a   :  { %201 = vmatpush3.bf16.msra.mxu0 %v198_v4  ;;  %p257_p2 = scmp.ne.s32.totalorder %s166_s12, %s256_s13  ;;  %p262_p4 = scmp.lt.s32.totalorder %s256_s13, %s256_s13 }
  0x2b   :  { %203 = vmatprep.subr.bf16.mxu0 %v202_v7 }
  0x2c   :  { %p263_p5 = por %p262_p4, %p261_p3 }
  0x2e   :  { %205 = vmatpush3.bf16.msra.mxu0 %v202_v7  ;;  %v51_v9 = vld [vmem:[#allocation2 + $0x8] sm:$0xff]  ;;  %v50_v10 = vld [vmem:[#allocation2] sm:$0xff]  ;;  %p264_p6 = pnand %p263_p5, %p257_p2 }
  0x31   :  { %196 = vmatmul.mubr.msk.f32.vlgmr.msra.gmra.mrb[0].mxu0 %vm47_vm0, %v53_v8 }
 0x104   :  { %v197_v11 = vpop.f32.mrb[0].mxu0 }
 0x105   :  { %v141_v12 = vadd.f32 %v197_v11, %v51_v9  ;;  %v131_v13 = vpop.f32.mrb[1].mxu0 }
 0x106   :  { %v140_v14 = vadd.f32 %v131_v13, %v50_v10 }
 0x107   :  { %143 = vst.msk [vmem:[#allocation2 + $0x8] sm:$0xff] %vm47_vm0, %v141_v12 }
 0x108   :  { %142 = vst.msk [vmem:[#allocation2] sm:$0xff] %vm47_vm0, %v140_v14 }
 0x10e   :  { %v148_v16 = vld [vmem:[#allocation2 + $0x8] sm:$0xff] }
 0x10f   :  { %v147_v17 = vld [vmem:[#allocation2] sm:$0xff]  ;;  %v157_v18 = vadd.f32 %v180_v15, %v148_v16 }
 0x110   :  { %v156_v19 = vadd.f32 %v180_v15, %v147_v17 }
 0x111   :  { %159 = vst.msk [vmem:[#allocation8 + $0x8] sm:$0xff] %vm47_vm0, %v157_v18 }
 0x112   :  { %158 = vst.msk [vmem:[#allocation8] sm:$0xff] %vm47_vm0, %v156_v19 }
 0x113   :  { %267 = shalt.err (!%p264_p6)
}
 0x114   :  { %s268_s15 = scalar_lea.hbm %s369_s3, 256 }
 0x115   :  { %p269_p7 = scmp.ne.s32.totalorder %s369_s3, %s268_s15  ;;  %p272_p8 = scmp.lt.u32.totalorder %s268_s15, %s369_s3 }
 0x117   :  { %p274_p9 = pnand %p272_p8, %p269_p7 }
 0x119   :  { %277 = shalt.err (!%p274_p9)
}
 0x11a   :  { %171 = dma.vmem_to_hbm [thread:$0]  %s166_s12, 256, %s369_s3, [#allocation5], %s285_s22, %s285_s22, %s286_s23  }
 0x11b   :  { %282 = dma.done.wait [#allocation5], 256  }
 0x11c   :  { %283 = vsyncadd [#allocation5], 4294967040 }
 0x11d   :  { %175 = vsyncpa [#allocation4], 1 }
 0x11e   :  { %176 = vsyncpa [#allocation7], 1 }
 0x11f   :  { %177 = vsyncpa [#allocation5], 1 }

</bundles_post_ra>
